<compile_context>
chip_gen: v5e
topology: v5e:2x2
jax: 0.10.0
libtpu: 0.0.40
codegen_flags: <defaults>
</compile_context>

<pallas_src>
import functools

import jax
import jax.numpy as jnp
from jax import lax
from jax.experimental import pallas as pl
from jax.experimental.pallas import tpu as pltpu

_LANE = 128
_SUBLANE = 8


def _round_up(n, m):
    return ((n + m - 1) // m) * m


def _fused_affine_ring_kernel(w_ref, c_ref, x_ref, o_ref, xpad_ref, *,
                              c_in, c_out, h, w, hp, wp):
    """Fused collapsed conv-chain kernel (one batch element per grid step).

    w_ref    : SMEM (c_out*c_in,)      flattened W_eff = w3@w2@w1
    c_ref    : SMEM (3*c_out,)         ring constants [ring0 | ring1 | ring2]
    x_ref    : VMEM (1, c_in, h, w)    raw (unpadded) input block
    o_ref    : VMEM (1, c_out, hp, wp) output block (exact shape, no slicing)
    xpad_ref : VMEM (c_in, hp_pad, lanes) zero-padded staging scratch
    """
    hp_pad = xpad_ref.shape[-2]
    lanes = xpad_ref.shape[-1]

    # ---- In-kernel zero padding (replaces the wrapper-side jnp.pad) -------
    xpad_ref[...] = jnp.zeros_like(xpad_ref)
    xpad_ref[:, :h, :w] = x_ref[0]          # aligned-origin masked store

    # Ring index = distance to the nearest true edge of the (hp, wp) image.
    # (Computed once on full (8,128)-aligned tiles; rows/cols beyond hp/wp
    #  fall into the interior branch and are simply never stored.)
    row = lax.broadcasted_iota(jnp.int32, (hp_pad, lanes), 0)
    col = lax.broadcasted_iota(jnp.int32, (hp_pad, lanes), 1)
    d = jnp.minimum(jnp.minimum(row, hp - 1 - row),
                    jnp.minimum(col, wp - 1 - col))
    mask0 = d == 0          # outermost ring
    mask1 = d == 1          # middle ring

    # Shift each channel plane by (+3, +3) with XLU rolls: the scratch has at
    # least 3 zero rows/cols of slack on every side, so the circular rotate is
    # an exact zero-padding shift (no wrap garbage, no unaligned stores).
    xs = []
    for c in range(c_in):
        v = xpad_ref[c]
        v = pltpu.roll(v, shift=3, axis=0)
        v = pltpu.roll(v, shift=3, axis=1)
        xs.append(v)

    for o in range(c_out):
        # Tiny channel contraction as VPU broadcast-FMAs on SMEM scalars;
        # bias folded into the first FMA (no separate jnp.full broadcast).
        acc = c_ref[2 * c_out + o] + w_ref[o * c_in] * xs[0]
        for c in range(1, c_in):
            acc = acc + w_ref[o * c_in + c] * xs[c]
        # Ring 2 already equals its constant (x is zero there); only the two
        # outermost rings need to be overwritten.
        val = jnp.where(mask0, c_ref[o],
                        jnp.where(mask1, c_ref[c_out + o], acc))
        o_ref[0, o] = val[:hp, :wp].astype(o_ref.dtype)


def fused_conv_chain(x_nchw, w_eff, ring_consts):
    """x: (N, C_in, H, W) -> (N, C_out, H+6, W+6); one pallas_call total."""
    n, c_in, h, w = x_nchw.shape
    c_out = w_eff.shape[0]
    hp, wp = h + 6, w + 6
    hp_pad = _round_up(hp, _SUBLANE)
    lanes = _round_up(wp, _LANE)

    kernel = functools.partial(_fused_affine_ring_kernel, c_in=c_in,
                               c_out=c_out, h=h, w=w, hp=hp, wp=wp)
    return pl.pallas_call(
        kernel,
        out_shape=jax.ShapeDtypeStruct((n, c_out, hp, wp), jnp.float32),
        grid_spec=pltpu.PrefetchScalarGridSpec(
            num_scalar_prefetch=0,
            grid=(n,),
            in_specs=[
                pl.BlockSpec((c_out * c_in,), lambda b: (0,),
                             memory_space=pltpu.MemorySpace.SMEM),
                pl.BlockSpec((3 * c_out,), lambda b: (0,),
                             memory_space=pltpu.MemorySpace.SMEM),
                pl.BlockSpec((1, c_in, h, w), lambda b: (b, 0, 0, 0)),
            ],
            out_specs=pl.BlockSpec((1, c_out, hp, wp),
                                   lambda b: (b, 0, 0, 0)),
            scratch_shapes=[pltpu.VMEM((c_in, hp_pad, lanes), jnp.float32)],
        ),
        compiler_params=pltpu.CompilerParams(
            dimension_semantics=("parallel",)),
    )(w_eff.reshape(-1).astype(jnp.float32),
      ring_consts.reshape(-1).astype(jnp.float32),
      x_nchw.astype(jnp.float32))


def init_params(key):
    k1, k2, k3, k4, k5, k6 = jax.random.split(key, 6)
    # PyTorch Conv2d weight (out, in, 1, 1) stored here as (out, in).
    return {
        "w1": 0.1 * jax.random.normal(k1, (7, 3), jnp.float32),
        "b1": 0.1 * jax.random.normal(k2, (7,), jnp.float32),
        "w2": 0.1 * jax.random.normal(k3, (8, 7), jnp.float32),
        "b2": 0.1 * jax.random.normal(k4, (8,), jnp.float32),
        "w3": 0.1 * jax.random.normal(k5, (2, 8), jnp.float32),
        "b3": 0.1 * jax.random.normal(k6, (2,), jnp.float32),
    }


@jax.jit
def model_forward(x_nchw, params, other=1.0):
    w1, b1 = params["w1"], params["b1"]
    w2, b2 = params["w2"], params["b2"]
    w3, b3 = params["w3"], params["b3"]
    other = jnp.asarray(other, jnp.float32)   # traced; folded into constants

    # Algebraic collapse of the 1x1-conv chain (no nonlinearity in between).
    w_eff = w3 @ w2 @ w1                                  # (C_out, C_in) = (2, 3)
    ring0 = b3 + other                                    # outermost padded ring
    ring1 = w3 @ b2 + b3 + other                          # middle ring
    ring2 = w3 @ (w2 @ b1 + b2) + b3 + other              # inner ring == interior bias
    ring_consts = jnp.concatenate([ring0, ring1, ring2])  # (3*C_out,)

    return fused_conv_chain(x_nchw, w_eff, ring_consts)   # (N, 2, H+6, W+6)


def _reference(x_nchw, params, other=1.0):
    # Pure-JAX reference of the original layer-by-layer semantics.
    def conv(x, wgt, b):
        xp = jnp.pad(x, ((0, 0), (0, 0), (1, 1), (1, 1)))
        return jnp.einsum("oc,nchw->nohw", wgt, xp) + b[None, :, None, None]

    y = conv(x_nchw, params["w1"], params["b1"])
    y = conv(y, params["w2"], params["b2"])
    y = conv(y, params["w3"], params["b3"]) + other
    return y


if __name__ == "__main__":
    key = jax.random.PRNGKey(0)
    kx, kp, kx2 = jax.random.split(key, 3)
    params = init_params(kp)

    # Spec-sized input (1, 3, 32, 32).
    x = jax.random.normal(kx, (1, 3, 32, 32), jnp.float32)
    out = jax.block_until_ready(model_forward(x, params))
    assert out.shape == (1, 2, 38, 38), out.shape
    ref = _reference(x, params)
    assert jnp.allclose(out, ref, atol=1e-4, rtol=1e-4), "mismatch vs reference"

    # Batched, smaller spatial size (exercises the batch grid axis).
    x2 = jax.random.normal(kx2, (2, 3, 16, 16), jnp.float32)
    out2 = jax.block_until_ready(model_forward(x2, params))
    assert out2.shape == (2, 2, 22, 22), out2.shape
    ref2 = _reference(x2, params)
    assert jnp.allclose(out2, ref2, atol=1e-4, rtol=1e-4), "batched mismatch"

    print("KERNEL_OK")
</pallas_src>

<mosaic_0001>
module attributes {stable_mosaic.version = 11 : i64} {
  func.func @_fused_affine_ring_kernel(%arg0: i32, %arg1: memref<6xf32, #tpu.memory_space<smem>>, %arg2: memref<6xf32, #tpu.memory_space<smem>>, %arg3: memref<1x3x32x32xf32, #tpu.memory_space<vmem>>, %arg4: memref<1x2x38x38xf32, #tpu.memory_space<vmem>>, %arg5: memref<3x40x128xf32, #tpu.memory_space<vmem>>) attributes {dimension_semantics = [#tpu.dimension_semantics<parallel>], iteration_bounds = array<i64: 1>, scalar_prefetch = 0 : i64, scratch_operands = 1 : i64, tpu.core_type = #tpu.core_type<tc>, window_params = [{transform_indices = @transform_0, window_bounds = array<i64: 6>}, {transform_indices = @transform_1, window_bounds = array<i64: 6>}, {transform_indices = @transform_2, window_bounds = array<i64: 1, 3, 32, 32>}, {transform_indices = @transform_3, window_bounds = array<i64: 1, 2, 38, 38>}]} {
    %cst = arith.constant 0.000000e+00 : f32
    %0 = vector.broadcast %cst : f32 to vector<3x40x128xf32>
    %c0 = arith.constant 0 : index
    %c0_0 = arith.constant 0 : index
    %c0_1 = arith.constant 0 : index
    %1 = vector.load %arg5[%c0, %c0_0, %c0_1] : memref<3x40x128xf32, #tpu.memory_space<vmem>>, vector<3x40x128xf32>
    tpu.vector_store %arg5[%c0, %c0_0, %c0_1], %0 {strides = array<i32>} : memref<3x40x128xf32, #tpu.memory_space<vmem>>, vector<3x40x128xf32>,
    %c0_2 = arith.constant 0 : index
    %c0_3 = arith.constant 0 : index
    %c0_4 = arith.constant 0 : index
    %c0_5 = arith.constant 0 : index
    %2 = vector.load %arg3[%c0_2, %c0_3, %c0_4, %c0_5] : memref<1x3x32x32xf32, #tpu.memory_space<vmem>>, vector<1x3x32x32xf32>
    %3 = vector.shape_cast %2 : vector<1x3x32x32xf32> to vector<3x32x32xf32>
    %c0_6 = arith.constant 0 : index
    %c0_7 = arith.constant 0 : index
    %c0_8 = arith.constant 0 : index
    %4 = vector.load %arg5[%c0_6, %c0_7, %c0_8] : memref<3x40x128xf32, #tpu.memory_space<vmem>>, vector<3x32x32xf32>
    tpu.vector_store %arg5[%c0_6, %c0_7, %c0_8], %3 {strides = array<i32>} : memref<3x40x128xf32, #tpu.memory_space<vmem>>, vector<3x32x32xf32>,
    %5 = tpu.iota {dimensions = array<i32: 0>} : vector<40x128xi32>
    %6 = tpu.iota {dimensions = array<i32: 1>} : vector<40x128xi32>
    %c37_i32 = arith.constant 37 : i32
    %7 = vector.broadcast %c37_i32 : i32 to vector<40x128xi32>
    %8 = arith.subi %7, %5 : vector<40x128xi32>
    %9 = arith.minsi %5, %8 : vector<40x128xi32>
    %c37_i32_9 = arith.constant 37 : i32
    %10 = vector.broadcast %c37_i32_9 : i32 to vector<40x128xi32>
    %11 = arith.subi %10, %6 : vector<40x128xi32>
    %12 = arith.minsi %6, %11 : vector<40x128xi32>
    %13 = arith.minsi %9, %12 : vector<40x128xi32>
    %c0_i32 = arith.constant 0 : i32
    %14 = vector.broadcast %c0_i32 : i32 to vector<40x128xi32>
    %15 = arith.cmpi eq, %13, %14 : vector<40x128xi32>
    %c1_i32 = arith.constant 1 : i32
    %16 = vector.broadcast %c1_i32 : i32 to vector<40x128xi32>
    %17 = arith.cmpi eq, %13, %16 : vector<40x128xi32>
    %c0_10 = arith.constant 0 : index
    %c0_11 = arith.constant 0 : index
    %c0_12 = arith.constant 0 : index
    %18 = vector.load %arg5[%c0_10, %c0_11, %c0_12] : memref<3x40x128xf32, #tpu.memory_space<vmem>>, vector<1x40x128xf32>
    %19 = vector.shape_cast %18 : vector<1x40x128xf32> to vector<40x128xf32>
    %c3_i32 = arith.constant 3 : i32
    %20 = tpu.dynamic_rotate %19 by %c3_i32 dim 0 : vector<40x128xf32>, i32 -> vector<40x128xf32>
    %c3_i32_13 = arith.constant 3 : i32
    %21 = tpu.dynamic_rotate %20 by %c3_i32_13 dim 1 : vector<40x128xf32>, i32 -> vector<40x128xf32>
    %c1 = arith.constant 1 : index
    %c0_14 = arith.constant 0 : index
    %c0_15 = arith.constant 0 : index
    %22 = vector.load %arg5[%c1, %c0_14, %c0_15] : memref<3x40x128xf32, #tpu.memory_space<vmem>>, vector<1x40x128xf32>
    %23 = vector.shape_cast %22 : vector<1x40x128xf32> to vector<40x128xf32>
    %c3_i32_16 = arith.constant 3 : i32
    %24 = tpu.dynamic_rotate %23 by %c3_i32_16 dim 0 : vector<40x128xf32>, i32 -> vector<40x128xf32>
    %c3_i32_17 = arith.constant 3 : i32
    %25 = tpu.dynamic_rotate %24 by %c3_i32_17 dim 1 : vector<40x128xf32>, i32 -> vector<40x128xf32>
    %c2 = arith.constant 2 : index
    %c0_18 = arith.constant 0 : index
    %c0_19 = arith.constant 0 : index
    %26 = vector.load %arg5[%c2, %c0_18, %c0_19] : memref<3x40x128xf32, #tpu.memory_space<vmem>>, vector<1x40x128xf32>
    %27 = vector.shape_cast %26 : vector<1x40x128xf32> to vector<40x128xf32>
    %c3_i32_20 = arith.constant 3 : i32
    %28 = tpu.dynamic_rotate %27 by %c3_i32_20 dim 0 : vector<40x128xf32>, i32 -> vector<40x128xf32>
    %c3_i32_21 = arith.constant 3 : i32
    %29 = tpu.dynamic_rotate %28 by %c3_i32_21 dim 1 : vector<40x128xf32>, i32 -> vector<40x128xf32>
    %c4 = arith.constant 4 : index
    %30 = memref.load %arg2[%c4] : memref<6xf32, #tpu.memory_space<smem>>
    %c0_22 = arith.constant 0 : index
    %31 = memref.load %arg1[%c0_22] : memref<6xf32, #tpu.memory_space<smem>>
    %32 = vector.broadcast %31 : f32 to vector<40x128xf32>
    %33 = arith.mulf %32, %21 : vector<40x128xf32>
    %34 = vector.broadcast %30 : f32 to vector<40x128xf32>
    %35 = arith.addf %34, %33 : vector<40x128xf32>
    %c1_23 = arith.constant 1 : index
    %36 = memref.load %arg1[%c1_23] : memref<6xf32, #tpu.memory_space<smem>>
    %37 = vector.broadcast %36 : f32 to vector<40x128xf32>
    %38 = arith.mulf %37, %25 : vector<40x128xf32>
    %39 = arith.addf %35, %38 : vector<40x128xf32>
    %c2_24 = arith.constant 2 : index
    %40 = memref.load %arg1[%c2_24] : memref<6xf32, #tpu.memory_space<smem>>
    %41 = vector.broadcast %40 : f32 to vector<40x128xf32>
    %42 = arith.mulf %41, %29 : vector<40x128xf32>
    %43 = arith.addf %39, %42 : vector<40x128xf32>
    %c0_25 = arith.constant 0 : index
    %44 = memref.load %arg2[%c0_25] : memref<6xf32, #tpu.memory_space<smem>>
    %c2_26 = arith.constant 2 : index
    %45 = memref.load %arg2[%c2_26] : memref<6xf32, #tpu.memory_space<smem>>
    %46 = vector.broadcast %45 : f32 to vector<40x128xf32>
    %47 = arith.select %17, %46, %43 : vector<40x128xi1>, vector<40x128xf32>
    %48 = vector.broadcast %44 : f32 to vector<40x128xf32>
    %49 = arith.select %15, %48, %47 : vector<40x128xi1>, vector<40x128xf32>
    %50 = vector.extract_strided_slice %49 {offsets = [0, 0], sizes = [38, 38], strides = [1, 1]} : vector<40x128xf32> to vector<38x38xf32>
    %c0_27 = arith.constant 0 : index
    %c0_28 = arith.constant 0 : index
    %c0_29 = arith.constant 0 : index
    %c0_30 = arith.constant 0 : index
    %51 = vector.load %arg4[%c0_27, %c0_28, %c0_29, %c0_30] : memref<1x2x38x38xf32, #tpu.memory_space<vmem>>, vector<1x1x38x38xf32>
    %52 = vector.shape_cast %51 : vector<1x1x38x38xf32> to vector<38x38xf32>
    %53 = vector.shape_cast %50 : vector<38x38xf32> to vector<1x1x38x38xf32>
    tpu.vector_store %arg4[%c0_27, %c0_28, %c0_29, %c0_30], %53 {strides = array<i32>} : memref<1x2x38x38xf32, #tpu.memory_space<vmem>>, vector<1x1x38x38xf32>,
    %c5 = arith.constant 5 : index
    %54 = memref.load %arg2[%c5] : memref<6xf32, #tpu.memory_space<smem>>
    %c3 = arith.constant 3 : index
    %55 = memref.load %arg1[%c3] : memref<6xf32, #tpu.memory_space<smem>>
    %56 = vector.broadcast %55 : f32 to vector<40x128xf32>
    %57 = arith.mulf %56, %21 : vector<40x128xf32>
    %58 = vector.broadcast %54 : f32 to vector<40x128xf32>
    %59 = arith.addf %58, %57 : vector<40x128xf32>
    %c4_31 = arith.constant 4 : index
    %60 = memref.load %arg1[%c4_31] : memref<6xf32, #tpu.memory_space<smem>>
    %61 = vector.broadcast %60 : f32 to vector<40x128xf32>
    %62 = arith.mulf %61, %25 : vector<40x128xf32>
    %63 = arith.addf %59, %62 : vector<40x128xf32>
    %c5_32 = arith.constant 5 : index
    %64 = memref.load %arg1[%c5_32] : memref<6xf32, #tpu.memory_space<smem>>
    %65 = vector.broadcast %64 : f32 to vector<40x128xf32>
    %66 = arith.mulf %65, %29 : vector<40x128xf32>
    %67 = arith.addf %63, %66 : vector<40x128xf32>
    %c1_33 = arith.constant 1 : index
    %68 = memref.load %arg2[%c1_33] : memref<6xf32, #tpu.memory_space<smem>>
    %c3_34 = arith.constant 3 : index
    %69 = memref.load %arg2[%c3_34] : memref<6xf32, #tpu.memory_space<smem>>
    %70 = vector.broadcast %69 : f32 to vector<40x128xf32>
    %71 = arith.select %17, %70, %67 : vector<40x128xi1>, vector<40x128xf32>
    %72 = vector.broadcast %68 : f32 to vector<40x128xf32>
    %73 = arith.select %15, %72, %71 : vector<40x128xi1>, vector<40x128xf32>
    %74 = vector.extract_strided_slice %73 {offsets = [0, 0], sizes = [38, 38], strides = [1, 1]} : vector<40x128xf32> to vector<38x38xf32>
    %c0_35 = arith.constant 0 : index
    %c1_36 = arith.constant 1 : index
    %c0_37 = arith.constant 0 : index
    %c0_38 = arith.constant 0 : index
    %75 = vector.load %arg4[%c0_35, %c1_36, %c0_37, %c0_38] : memref<1x2x38x38xf32, #tpu.memory_space<vmem>>, vector<1x1x38x38xf32>
    %76 = vector.shape_cast %75 : vector<1x1x38x38xf32> to vector<38x38xf32>
    %77 = vector.shape_cast %74 : vector<38x38xf32> to vector<1x1x38x38xf32>
    tpu.vector_store %arg4[%c0_35, %c1_36, %c0_37, %c0_38], %77 {strides = array<i32>} : memref<1x2x38x38xf32, #tpu.memory_space<vmem>>, vector<1x1x38x38xf32>,
    return
  }
  func.func @transform_0(%arg0: i32) -> i32 {
    %c0_i32 = arith.constant 0 : i32
    %c0_i32_0 = arith.constant 0 : i32
    return %c0_i32 : i32
  }
  func.func @transform_1(%arg0: i32) -> i32 {
    %c0_i32 = arith.constant 0 : i32
    %c0_i32_0 = arith.constant 0 : i32
    return %c0_i32 : i32
  }
  func.func @transform_2(%arg0: i32) -> (i32, i32, i32, i32) {
    %c0_i32 = arith.constant 0 : i32
    %c0_i32_0 = arith.constant 0 : i32
    %c0_i32_1 = arith.constant 0 : i32
    %c0_i32_2 = arith.constant 0 : i32
    return %arg0, %c0_i32, %c0_i32_0, %c0_i32_1 : i32, i32, i32, i32
  }
  func.func @transform_3(%arg0: i32) -> (i32, i32, i32, i32) {
    %c0_i32 = arith.constant 0 : i32
    %c0_i32_0 = arith.constant 0 : i32
    %c0_i32_1 = arith.constant 0 : i32
    %c0_i32_2 = arith.constant 0 : i32
    return %arg0, %c0_i32, %c0_i32_0, %c0_i32_1 : i32, i32, i32, i32
  }
}

</mosaic_0001>

<bundles_post_ra>
// kernel: model_forward.1
= control target key start
LH: loop header
LB: loop body
LE: loop exit
PB: predicated region body
PF: predicated region fallthrough
CT: control target
= control target key end

     0   :  { %8 = vsyncpa [#allocation5], 0  ;;  %s698_s0 = inlined_call_operand.vmem [shape: f32[6], index: 0, kind: input, shape index: {}]   ;;  %s699_s1 = inlined_call_operand.vmem [shape: f32[6], index: 1, kind: input, shape index: {}]   ;;  %s700_s2 = inlined_call_operand.hbm [shape: f32[1,3,32,32], index: 2, kind: input, shape index: {}]   ;;  %s701_s3 = inlined_call_operand.vmem [shape: f32[1,2,38,38], index: 3, kind: output, shape index: {}]  }
   0x1   :  { %9 = vsyncpa [#allocation7], 0  ;;  %s16_s14 = sshll.u32 %s698_s0, 4  ;;  %s17_s14 = int_to_ptr.vmem [resolvable:$true] %s16_s14 }
   0x2   :  { %10 = vsyncpa [#allocation4], 0  ;;  %s25_s17 = sshll.u32 %s699_s1, 4  ;;  %s419_s18 = smov [#allocation3]   ;;  %s26_s17 = int_to_ptr.vmem [resolvable:$true] %s25_s17 }
   0x3   :  { %19 = dma.vmem_to_smem %s17_s14, 16, %s419_s18, [#allocation5]  }
   0x4   :  { %s420_s19 = smov [#allocation6]   ;;  %s33_s22 = sshll.u32 %s700_s2, 4  ;;  %s34_s22 = int_to_ptr.hbm [resolvable:$true] %s33_s22 }
   0x5   :  { %28 = dma.vmem_to_smem %s26_s17, 16, %s420_s19, [#allocation7]  }
   0x6   :  { %s421_s23 = smov [#allocation8]   ;;  %s422_s0 = smov 128  }
   0x7   :  { %s35_s24 = sshll.u32 %s421_s23, 4  ;;  %s423_s25 = smov 8   ;;  %s36_s24 = int_to_ptr.vmem [resolvable:$true] %s35_s24 }
   0x8   :  { %41 = dma.hbm_to_vmem [thread:$0]  %s34_s22, 1536, %s36_s24, [#allocation4], %s422_s0, %s422_s0, %s423_s25  }
   0x9   :  { %413 = dma.done.wait [#allocation5], 16  }
   0xa   :  { %414 = vsyncadd [#allocation5], 4294967280 }
   0xb   :  { %415 = dma.done.wait [#allocation7], 16  }
   0xc   :  { %416 = vsyncadd [#allocation7], 4294967280 }
   0xd   :  { %417 = dma.done.wait [#allocation4], 1536  }
   0xe   :  { %418 = vsyncadd [#allocation4], 4294965760 }
   0xf   :  { %54 = sfence }
  0x10   :  { %v71_v0 = vld [vmem:[#allocation8 + $0x8] sm:$0xff]  ;;  %vm82_vm0 = vcmask 261120   ;;  %v424_v1 = vmov 0.0   ;;  %v72_v2 = vld [vmem:[#allocation8 + $0x10] sm:$0xff]  ;;  %v95_v3 = vlaneseq  ;;  %s425_s1 = smov 3   ;;  %v70_v10 = vld [vmem:[#allocation8] sm:$0xff] }
  0x11   :  { %56 = vst [vmem:[#allocation2 + $0x8] sm:$0xff] %v424_v1  ;;  %v73_v11 = vld [vmem:[#allocation8 + $0x18] sm:$0xff]  ;;  %v75_v12 = vld [vmem:[#allocation8 + $0x28] sm:$0xff]  ;;  %v76_v13 = vld [vmem:[#allocation8 + $0x30] sm:$0xff]  ;;  %v150_v19 = vrot.slane %v424_v1, 5  ;;  %s220_s2 = sld [smem:[#allocation3]] }
  0x12   :  { %57 = vst [vmem:[#allocation2 + $0x10] sm:$0xff] %v424_v1  ;;  %v458_v4 = vshrl.u32 %v95_v3, 7  ;;  %v74_v14 = vld [vmem:[#allocation8 + $0x20] sm:$0xff]  ;;  %v77_v16 = vld [vmem:[#allocation8 + $0x38] sm:$0xff]  ;;  %v80_v17 = vld [vmem:[#allocation8 + $0x50] sm:$0xff]  ;;  %v102_v58 = vand.u32 127, %v95_v3 }
  0x13   :  { %84 = vst.msk [vmem:[#allocation2 + $0x8] sm:$0xff] %vm82_vm0, %v71_v0  ;;  %v78_v15 = vld [vmem:[#allocation8 + $0x40] sm:$0xff]  ;;  %v81_v18 = vld [vmem:[#allocation8 + $0x58] sm:$0xff]  ;;  %v79_v20 = vld [vmem:[#allocation8 + $0x48] sm:$0xff]  ;;  %s348_s26 = sld [smem:[#allocation3 + $0x3]]  ;;  %vm271_vm8 = vcmask 310272  }
  0x14   :  { %85 = vst.msk [vmem:[#allocation2 + $0x10] sm:$0xff] %vm82_vm0, %v72_v2  ;;  %vm151_vm1 = vcmp.lt.s32.totalorder %v458_v4, 3  ;;  %s343_s27 = sld [smem:[#allocation6 + $0x4]]  ;;  %v118_v59 = vsub.s32 37, %v102_v58 }
  0x15   :  { %55 = vst [vmem:[#allocation2] sm:$0xff] %v424_v1  ;;  %s347_s28 = sld [smem:[#allocation6 + $0x5]] }
  0x16   :  { %58 = vst [vmem:[#allocation2 + $0x18] sm:$0xff] %v424_v1  ;;  %s344_s29 = sld [smem:[#allocation3 + $0x1]]  ;;  %vm119_vm2 = vcmp.lt.s32.totalorder %v102_v58, %v118_v59 }
  0x17   :  { %60 = vst [vmem:[#allocation2 + $0x28] sm:$0xff] %v424_v1  ;;  %s349_s30 = sld [smem:[#allocation3 + $0x4]]  ;;  %v221_v61 = vstv %s220_s2  ;;  %v520_v3 = vsel %vm119_vm2, %v102_v58, %v118_v59  ;;  %vm276_vm2 = vcmask 308224  }
  0x18   :  { %61 = vst [vmem:[#allocation2 + $0x30] sm:$0xff] %v424_v1  ;;  %s345_s4 = sld [smem:[#allocation3 + $0x2]]  ;;  %vm121_vm4 = vcmp.lt.s32.totalorder %v458_v4, %v520_v3 }
  0x19   :  { %62 = vst [vmem:[#allocation2 + $0x38] sm:$0xff] %v424_v1  ;;  %v280_v63 = vstv %s348_s26  ;;  %s346_s5 = sld [smem:[#allocation6 + $0x2]] }
  0x1a   :  { %v142_v5 = vld [vmem:[#allocation2 + $0x8] sm:$0xff]  ;;  %63 = vst [vmem:[#allocation2 + $0x40] sm:$0xff] %v424_v1  ;;  %s257_s6 = sld [smem:[#allocation6]] }
  0x1b   :  { %v143_v6 = vld [vmem:[#allocation2 + $0x10] sm:$0xff]  ;;  %v147_v7 = vrot.slane %v142_v5, 5  ;;  %65 = vst [vmem:[#allocation2 + $0x50] sm:$0xff] %v424_v1  ;;  %s350_s7 = sld [smem:[#allocation3 + $0x5]]  ;;  %v100_v5 = vadd.s32 32, %v458_v4 }
  0x1c   :  { %v148_v8 = vrot.slane %v143_v6, 5  ;;  %66 = vst [vmem:[#allocation2 + $0x58] sm:$0xff] %v424_v1  ;;  %v523_v6 = vstv %s343_s27  ;;  %s525_s8 = sld [smem:[#allocation6 + $0x3]] }
  0x1d   :  { %67 = vst [vmem:[#allocation2 + $0x60] sm:$0xff] %v424_v1  ;;  %s533_s9 = sld [smem:[#allocation6 + $0x1]] }
  0x1e   :  { %v154_v9 = vsel %vm151_vm1, %v147_v7, %v148_v8  ;;  %68 = vst [vmem:[#allocation2 + $0x68] sm:$0xff] %v424_v1  ;;  %v97_v1 = vadd.s32 8, %v458_v4 }
  0x1f   :  { %161 = vrot.lane.b32.xlu1 %v154_v9, %s425_s1  ;;  %83 = vst.msk [vmem:[#allocation2] sm:$0xff] %vm82_vm0, %v70_v10  ;;  %v529_v9 = vstv %s344_s29  ;;  %v531_v10 = vstv %s349_s30 }
  0x20   :  { %86 = vst.msk [vmem:[#allocation2 + $0x18] sm:$0xff] %vm82_vm0, %v73_v11  ;;  %vm123_vm3 = vcmp.lt.s32.totalorder %v97_v1, %v520_v3 }
  0x21   :  { %88 = vst.msk [vmem:[#allocation2 + $0x30] sm:$0xff] %vm82_vm0, %v75_v12 }
  0x22   :  { %89 = vst.msk [vmem:[#allocation2 + $0x38] sm:$0xff] %vm82_vm0, %v76_v13 }
  0x23   :  { %87 = vst.msk [vmem:[#allocation2 + $0x28] sm:$0xff] %vm82_vm0, %v74_v14  ;;  %v107_v14 = vsub.s32 37, %v100_v5 }
  0x24   :  { %91 = vst.msk [vmem:[#allocation2 + $0x50] sm:$0xff] %vm82_vm0, %v78_v15 }
  0x25   :  { %90 = vst.msk [vmem:[#allocation2 + $0x40] sm:$0xff] %vm82_vm0, %v77_v16  ;;  %vm129_vm5 = vcmp.lt.s32.totalorder %v107_v14, %v520_v3 }
  0x26   :  { %v141_v21 = vld [vmem:[#allocation2] sm:$0xff]  ;;  %93 = vst.msk [vmem:[#allocation2 + $0x60] sm:$0xff] %vm82_vm0, %v80_v17 }
  0x27   :  { %v146_v22 = vrot.slane %v141_v21, 5  ;;  %v144_v23 = vld [vmem:[#allocation2 + $0x18] sm:$0xff]  ;;  %94 = vst.msk [vmem:[#allocation2 + $0x68] sm:$0xff] %vm82_vm0, %v81_v18 }
  0x28   :  { %v149_v24 = vrot.slane %v144_v23, 5  ;;  %92 = vst.msk [vmem:[#allocation2 + $0x58] sm:$0xff] %vm82_vm0, %v79_v20  ;;  %v169_v26 = vld [vmem:[#allocation2 + $0x30] sm:$0xff]  ;;  %v551_v23 = vstv %s345_s4 }
  0x29   :  { %v156_v25 = vsel %vm151_vm1, %v150_v19, %v146_v22  ;;  %v170_v27 = vld [vmem:[#allocation2 + $0x38] sm:$0xff]  ;;  %v174_v31 = vrot.slane %v169_v26, 5  ;;  %v155_v34 = vsel %vm151_vm1, %v146_v22, %v147_v7  ;;  %v549_v22 = vsel %vm123_vm3, %v97_v1, %v520_v3 }
  0x2a   :  { %157 = vrot.lane.b32.xlu0 %v156_v25, %s425_s1  ;;  %v153_v28 = vsel %vm151_vm1, %v148_v8, %v149_v24  ;;  %v152_v29 = vsel %vm151_vm1, %v149_v24, %v150_v19  ;;  %v168_v30 = vld [vmem:[#allocation2 + $0x28] sm:$0xff]  ;;  %v175_v32 = vrot.slane %v170_v27, 5  ;;  %v527_v8 = vstv %s347_s28 }
  0x2b   :  { %163 = vrot.lane.b32.xlu1 %v153_v28, %s425_s1  ;;  %165 = vrot.lane.b32.xlu2 %v152_v29, %s425_s1  ;;  %v173_v33 = vrot.slane %v168_v30, 5  ;;  %v194_v37 = vld [vmem:[#allocation2 + $0x50] sm:$0xff]  ;;  %v553_v24 = vstv %s346_s5  ;;  %v555_v25 = vstv %s257_s6  ;;  %v558_v26 = vadd.s32 24, %v458_v4 }
  0x2c   :  { %v180_v35 = vsel %vm151_vm1, %v174_v31, %v175_v32  ;;  %v171_v38 = vld [vmem:[#allocation2 + $0x40] sm:$0xff]  ;;  %v199_v39 = vrot.slane %v194_v37, 5  ;;  %v98_v27 = vadd.s32 16, %v458_v4  ;;  %v564_v29 = vstv %s350_s7 }
  0x2d   :  { %v182_v36 = vsel %vm151_vm1, %v150_v19, %v173_v33  ;;  %v176_v40 = vrot.slane %v171_v38, 5  ;;  %v181_v41 = vsel %vm151_vm1, %v173_v33, %v174_v31  ;;  %v196_v44 = vld [vmem:[#allocation2 + $0x60] sm:$0xff]  ;;  %vm132_vm6 = vcmp.eq.s32.totalorder %v549_v22, 0 }
  0x2e   :  { %v208_v42 = vsel %vm151_vm1, %v150_v19, %v199_v39  ;;  %v197_v45 = vld [vmem:[#allocation2 + $0x68] sm:$0xff]  ;;  %v201_v47 = vrot.slane %v196_v44, 5  ;;  %vm137_vm7 = vcmp.eq.s32.totalorder %v549_v22, 1  ;;  %v572_v33 = vstv %s525_s8 }
  0x2f   :  { %v179_v43 = vsel %vm151_vm1, %v175_v32, %v176_v40  ;;  %v195_v46 = vld [vmem:[#allocation2 + $0x58] sm:$0xff]  ;;  %v202_v48 = vrot.slane %v197_v45, 5  ;;  %v178_v50 = vsel %vm151_vm1, %v176_v40, %v150_v19  ;;  %v579_v37 = vstv %s533_s9 }
  0x30   :  { %v200_v49 = vrot.slane %v195_v46, 5  ;;  %v122_v38 = vsel %vm121_vm4, %v458_v4, %v520_v3  ;;  %v106_v40 = vsub.s32 37, %v558_v26 }
  0x31   :  { %v205_v51 = vsel %vm151_vm1, %v201_v47, %v202_v48  ;;  %v204_v54 = vsel %vm151_vm1, %v202_v48, %v150_v19  ;;  %vm136_vm9 = vcmp.eq.s32.totalorder %v122_v38, 1  ;;  %vm131_vm10 = vcmp.eq.s32.totalorder %v122_v38, 0 }
  0x32   :  { %159 = vrot.lane.b32.xlu0 %v155_v34, %s425_s1  ;;  %v207_v52 = vsel %vm151_vm1, %v199_v39, %v200_v49  ;;  %v206_v53 = vsel %vm151_vm1, %v200_v49, %v201_v47  ;;  %v584_v39 = vsel %vm129_vm5, %v107_v14, %v520_v3  ;;  %vm127_vm13 = vcmp.lt.s32.totalorder %v106_v40, %v520_v3 }
  0x33   :  { %187 = vrot.lane.b32.xlu1 %v180_v35, %s425_s1  ;;  %183 = vrot.lane.b32.xlu2 %v182_v36, %s425_s1  ;;  %vm135_vm12 = vcmp.eq.s32.totalorder %v584_v39, 0  ;;  %vm140_vm14 = vcmp.eq.s32.totalorder %v584_v39, 1 }
  0x3a   :  { %185 = vrot.lane.b32.xlu0 %v181_v41, %s425_s1  ;;  %v105_v41 = vsub.s32 37, %v98_v27 }
  0x3b   :  { %209 = vrot.lane.b32.xlu1 %v208_v42, %s425_s1  ;;  %189 = vrot.lane.b32.xlu2 %v179_v43, %s425_s1 }
  0x3c   :  { %vm112_vm11 = vcmp.lt.s32.totalorder %v98_v27, %v105_v41 }
  0x42   :  { %191 = vrot.lane.b32.xlu0 %v178_v50, %s425_s1 }
  0x43   :  { %215 = vrot.lane.b32.xlu1 %v205_v51, %s425_s1  ;;  %211 = vrot.lane.b32.xlu2 %v207_v52, %s425_s1 }
  0x4a   :  { %213 = vrot.lane.b32.xlu0 %v206_v53, %s425_s1 }
  0x4b   :  { %217 = vrot.lane.b32.xlu2 %v204_v54, %s425_s1 }
  0x85   :  { %v166_v55 = vpop.permute.xlu2 %165 }
  0x86   :  { %v226_v2 = vmul.f32 %v221_v61, %v166_v55  ;;  %v285_v7 = vmul.f32 %v280_v63, %v166_v55 }
  0x88   :  { %v537_v11 = vadd.f32 %v523_v6, %v226_v2  ;;  %v540_v15 = vadd.f32 %v527_v8, %v285_v7 }
  0x8d   :  { %v184_v57 = vpop.permute.xlu2 %183 }
  0x8e   :  { %v235_v17 = vmul.f32 %v529_v9, %v184_v57  ;;  %v294_v18 = vmul.f32 %v531_v10, %v184_v57 }
  0x91   :  { %v162_v56 = vpop.permute.xlu1 %161 }
  0x92   :  { %v224_v12 = vmul.f32 %v221_v61, %v162_v56  ;;  %v542_v16 = vmul.f32 %v280_v63, %v162_v56 }
  0x94   :  { %v562_v28 = vadd.f32 %v523_v6, %v224_v12 }
  0x95   :  { %v517_v0 = vpop.permute.xlu2 %189 }
  0x96   :  { %v238_v36 = vmul.f32 %v529_v9, %v517_v0  ;;  %v297_v55 = vmul.f32 %v531_v10, %v517_v0 }
  0x9c   :  { %v158_v60 = vpop.permute.xlu0 %157 }
  0x9d   :  { %v164_v62 = vpop.permute.xlu1 %163  ;;  %v222_v20 = vmul.f32 %v221_v61, %v158_v60  ;;  %v281_v21 = vmul.f32 %v280_v63, %v158_v60  ;;  %v212_v30 = vpop.permute.xlu2 %211 }
  0x9e   :  { %v225_v42 = vmul.f32 %v221_v61, %v164_v62  ;;  %v284_v43 = vmul.f32 %v280_v63, %v164_v62  ;;  %v248_v45 = vmul.f32 %v551_v23, %v212_v30  ;;  %v307_v46 = vmul.f32 %v564_v29, %v212_v30 }
  0x9f   :  { %v228_v34 = vadd.f32 %v523_v6, %v222_v20  ;;  %v287_v35 = vadd.f32 %v527_v8, %v281_v21  ;;  %v128_v20 = vsel %vm127_vm13, %v106_v40, %v520_v3 }
  0xa0   :  { %v231_v62 = vadd.f32 %v523_v6, %v225_v42  ;;  %vm139_vm15 = vcmp.eq.s32.totalorder %v128_v20, 1  ;;  %vm134_vm0 = vcmp.eq.s32.totalorder %v128_v20, 0 }
  0xa1   :  { %v240_v51 = vadd.f32 %v235_v17, %v228_v34  ;;  %v299_v52 = vadd.f32 %v294_v18, %v287_v35 }
  0xa4   :  { %v160_v13 = vpop.permute.xlu0 %159 }
  0xa5   :  { %v546_v19 = vpop.permute.xlu1 %187  ;;  %v223_v31 = vmul.f32 %v221_v61, %v160_v13  ;;  %v282_v32 = vmul.f32 %v280_v63, %v160_v13  ;;  %v290_v63 = vadd.f32 %v527_v8, %v284_v43  ;;  %v218_v2 = vpop.permute.xlu2 %217  ;;  %v113_v13 = vsel %vm112_vm11, %v98_v27, %v105_v41 }
  0xa6   :  { %v251_v26 = vmul.f32 %v551_v23, %v218_v2  ;;  %v310_v27 = vmul.f32 %v564_v29, %v218_v2  ;;  %vm125_vm1 = vcmp.lt.s32.totalorder %v113_v13, %v520_v3  ;;  %v237_v42 = vmul.f32 %v529_v9, %v546_v19 }
  0xa7   :  { %v229_v47 = vadd.f32 %v523_v6, %v223_v31  ;;  %v288_v48 = vadd.f32 %v527_v8, %v282_v32  ;;  %v243_v31 = vadd.f32 %v238_v36, %v231_v62  ;;  %v302_v32 = vadd.f32 %v297_v55, %v290_v63 }
  0xa8   :  { %v296_v43 = vmul.f32 %v531_v10, %v546_v19 }
  0xac   :  { %v186_v44 = vpop.permute.xlu0 %185 }
  0xad   :  { %v236_v49 = vmul.f32 %v529_v9, %v186_v44  ;;  %v295_v4 = vmul.f32 %v531_v10, %v186_v44  ;;  %v210_v50 = vpop.permute.xlu1 %209 }
  0xae   :  { %v247_v53 = vmul.f32 %v551_v23, %v210_v50  ;;  %v306_v54 = vmul.f32 %v564_v29, %v210_v50 }
  0xaf   :  { %v241_v56 = vadd.f32 %v236_v49, %v229_v47  ;;  %v300_v57 = vadd.f32 %v295_v4, %v288_v48  ;;  %v126_v49 = vsel %vm125_vm1, %v113_v13, %v520_v3  ;;  %v242_v4 = vadd.f32 %v237_v42, %v562_v28 }
  0xb0   :  { %v252_v58 = vadd.f32 %v247_v53, %v240_v51  ;;  %v311_v59 = vadd.f32 %v306_v54, %v299_v52  ;;  %vm138_vm3 = vcmp.eq.s32.totalorder %v126_v49, 1  ;;  %vm133_vm4 = vcmp.eq.s32.totalorder %v126_v49, 0 }
  0xb1   :  { %v253_v60 = vadd.f32 %v248_v45, %v241_v56  ;;  %v312_v61 = vadd.f32 %v307_v46, %v300_v57 }
  0xb2   :  { %v260_v1 = vsel %vm136_vm9, %v553_v24, %v252_v58  ;;  %v319_v0 = vsel %vm136_vm9, %v572_v33, %v311_v59 }
  0xb3   :  { %v261_v5 = vsel %vm137_vm7, %v553_v24, %v253_v60  ;;  %v320_v7 = vsel %vm137_vm7, %v572_v33, %v312_v61  ;;  %v266_v12 = vsel %vm131_vm10, %v555_v25, %v260_v1  ;;  %v325_v17 = vsel %vm131_vm10, %v579_v37, %v319_v0 }
  0xb4   :  { %v267_v6 = vsel %vm132_vm6, %v555_v25, %v261_v5  ;;  %v326_v14 = vsel %vm132_vm6, %v579_v37, %v320_v7  ;;  %272 = vst.msk [vmem:[%s701_s3] sm:$0xff] %vm271_vm8, %v266_v12  ;;  %v192_v18 = vpop.permute.xlu0 %191 }
  0xb5   :  { %273 = vst.msk [vmem:[%s701_s3 + $0x8] sm:$0xff] %vm271_vm8, %v267_v6  ;;  %v239_v21 = vmul.f32 %v529_v9, %v192_v18  ;;  %v298_v22 = vmul.f32 %v531_v10, %v192_v18  ;;  %v216_v30 = vpop.permute.xlu1 %215 }
  0xb6   :  { %354 = vst.msk [vmem:[%s701_s3 + $0x30] sm:$0xff] %vm271_vm8, %v326_v14  ;;  %v250_v34 = vmul.f32 %v551_v23, %v216_v30  ;;  %v309_v35 = vmul.f32 %v564_v29, %v216_v30 }
  0xb7   :  { %353 = vst.msk [vmem:[%s701_s3 + $0x28] sm:$0xff] %vm271_vm8, %v325_v17  ;;  %v244_v38 = vadd.f32 %v239_v21, %v537_v11  ;;  %v303_v40 = vadd.f32 %v298_v22, %v540_v15  ;;  %v289_v11 = vadd.f32 %v527_v8, %v542_v16 }
  0xb8   :  { %v255_v36 = vadd.f32 %v250_v34, %v243_v31  ;;  %v314_v41 = vadd.f32 %v309_v35, %v302_v32 }
  0xb9   :  { %v256_v44 = vadd.f32 %v251_v26, %v244_v38  ;;  %v315_v45 = vadd.f32 %v310_v27, %v303_v40  ;;  %v301_v3 = vadd.f32 %v296_v43, %v289_v11 }
  0xba   :  { %v263_v15 = vsel %vm139_vm15, %v553_v24, %v255_v36  ;;  %v322_v46 = vsel %vm139_vm15, %v572_v33, %v314_v41 }
  0xbb   :  { %v264_v47 = vsel %vm140_vm14, %v553_v24, %v256_v44  ;;  %v323_v48 = vsel %vm140_vm14, %v572_v33, %v315_v45  ;;  %v269_v9 = vsel %vm134_vm0, %v555_v25, %v263_v15  ;;  %v328_v16 = vsel %vm134_vm0, %v579_v37, %v322_v46 }
  0xbc   :  { %v270_v10 = vsel %vm135_vm12, %v555_v25, %v264_v47  ;;  %v329_v8 = vsel %vm135_vm12, %v579_v37, %v323_v48  ;;  %275 = vst.msk [vmem:[%s701_s3 + $0x18] sm:$0xff] %vm271_vm8, %v269_v9  ;;  %v214_v19 = vpop.permute.xlu0 %213 }
  0xbd   :  { %277 = vst.msk [vmem:[%s701_s3 + $0x20] sm:$0x3f] %vm276_vm2, %v270_v10  ;;  %v249_v39 = vmul.f32 %v551_v23, %v214_v19  ;;  %v308_v50 = vmul.f32 %v564_v29, %v214_v19 }
  0xbe   :  { %357 = vst.msk [vmem:[%s701_s3 + $0x48] sm:$0x3f] %vm276_vm2, %v329_v8 }
  0xbf   :  { %356 = vst.msk [vmem:[%s701_s3 + $0x40] sm:$0xff] %vm271_vm8, %v328_v16  ;;  %v254_v28 = vadd.f32 %v249_v39, %v242_v4  ;;  %v313_v51 = vadd.f32 %v308_v50, %v301_v3 }
  0xc1   :  { %v262_v52 = vsel %vm138_vm3, %v553_v24, %v254_v28  ;;  %v321_v23 = vsel %vm138_vm3, %v572_v33, %v313_v51 }
  0xc2   :  { %v268_v29 = vsel %vm133_vm4, %v555_v25, %v262_v52  ;;  %v327_v53 = vsel %vm133_vm4, %v579_v37, %v321_v23 }
  0xc3   :  { %274 = vst.msk [vmem:[%s701_s3 + $0x10] sm:$0xff] %vm271_vm8, %v268_v29 }
  0xc4   :  { %355 = vst.msk [vmem:[%s701_s3 + $0x38] sm:$0xff] %vm271_vm8, %v327_v53 }
  0xc5   :  { %340 = vsyncpa [#allocation4], 1 }
  0xc6   :  { %341 = vsyncpa [#allocation5], 1 }
  0xc7   :  { %342 = vsyncpa [#allocation7], 1 }

</bundles_post_ra>
